<compile_context>
chip_gen: v5e
topology: v5e:2x2
jax: 0.10.0
libtpu: 0.0.40
codegen_flags: <defaults>
</compile_context>

<pallas_src>
import jax
import jax.numpy as jnp
from jax.experimental import pallas as pl
from jax.experimental.pallas import tpu as pltpu


def _vmem_config():
    """Returns (per-tile block budget, vmem_limit_bytes) from physical VMEM."""
    cap = 64 * 1024 * 1024  # conservative default = v7x per-TC physical VMEM
    try:
        info = pltpu.get_tpu_info()
        cap = int(getattr(info, "vmem_capacity_bytes", cap))
    except Exception:
        pass
    # Leave ~1/4 of physical VMEM for compiler temporaries / internal scratch:
    # 48 MiB limit on v7x, 96 MiB on v5e/v6e.
    vmem_limit = min(3 * cap // 4, 96 * 1024 * 1024)
    # The double-buffered input + output blocks (~4 * C * T * itemsize) must fit.
    tile_budget = vmem_limit // 2
    return tile_budget, vmem_limit


def _pick_spatial_tile(hw, c, itemsize, n, budget_bytes):
    """Largest multiple-of-128 divisor of `hw` (hw % 128 == 0) such that
    (a) the double-buffered in+out blocks stay under `budget_bytes`, and
    (b) the grid has >= 2 points when N == 1 (v7x megacore)."""
    assert hw % 128 == 0
    max_t = budget_bytes // (4 * c * itemsize)       # 2 bufs x (in + out)
    max_t = max(128, (max_t // 128) * 128)           # never below one lane-full tile
    want_tiles = 2 if n == 1 else 1
    best = 128
    t = 128
    while t <= hw:
        if hw % t == 0 and t <= max_t and (hw // t) >= want_tiles:
            best = t
        t += 128
    return best


def _sse_kernel(x_ref, w_ref, o_ref):
    """x_ref: (1, C, T) spatial tile of one image; w_ref: (1, C) f32; o_ref: (1, C, T)."""
    x = x_ref[...]                       # native I/O dtype; no eager full-tile f32 copy
    w = w_ref[...]                       # (1, C) f32, constant block -> DMA'd once
    # Channel contraction in f32 (sublane reduce on XLU); the cast to f32
    # fuses per-vreg into the multiply.
    q = jnp.sum(x * w[:, :, None], axis=1, keepdims=True)   # (1, 1, T) f32
    q = jax.nn.sigmoid(q)                                    # EUP
    # Final broadcast multiply in the I/O dtype (bf16 VALU on v6e/v7x).
    o_ref[...] = (x * q.astype(o_ref.dtype)).astype(o_ref.dtype)


def sse_forward_flat(x, weight_row):
    """sSE on flattened activations.

    x:          (N, C, HW) with HW % 128 == 0 (f32 or bf16).
    weight_row: (1, C) f32 Conv1x1 weight (out_channels=1, no bias).
    Returns (N, C, HW) with the same dtype as x.
    """
    N, C, HW = x.shape
    assert HW % 128 == 0, "pad the spatial axis to a multiple of 128 first"
    itemsize = jnp.dtype(x.dtype).itemsize
    tile_budget, vmem_limit = _vmem_config()
    t_hw = _pick_spatial_tile(HW, C, itemsize, N, tile_budget)
    num_tiles = HW // t_hw

    cost = pl.CostEstimate(
        flops=3 * N * C * HW,                       # contraction + broadcast multiply
        transcendentals=N * HW,                     # sigmoid per pixel
        bytes_accessed=2 * N * C * HW * itemsize + C * 4,
    )

    return pl.pallas_call(
        _sse_kernel,
        out_shape=jax.ShapeDtypeStruct((N, C, HW), x.dtype),
        grid_spec=pltpu.PrefetchScalarGridSpec(
            num_scalar_prefetch=0,
            grid=(N, num_tiles),
            in_specs=[
                pl.BlockSpec((1, C, t_hw), lambda n, s: (n, 0, s)),
                pl.BlockSpec((1, C), lambda n, s: (0, 0)),
            ],
            out_specs=pl.BlockSpec((1, C, t_hw), lambda n, s: (n, 0, s)),
        ),
        compiler_params=pltpu.CompilerParams(
            dimension_semantics=("parallel", "parallel"),
            vmem_limit_bytes=vmem_limit),
        cost_estimate=cost,
    )(x, weight_row)


def sse_forward(U, weight):
    """PyTorch-compatible entry point.

    U:      (N, C, H, W) activations (f32 or bf16).
    weight: (1, C, 1, 1) Conv2d(C, 1, kernel_size=1, bias=False) weight.
    """
    N, C, H, W = U.shape
    HW = H * W
    x = U.reshape(N, C, HW)
    w = weight.reshape(1, C).astype(jnp.float32)   # cast once in the wrapper
    pad = (-HW) % 128
    if pad:
        # Zero-pad the spatial axis so every output row is lane-dense; padded
        # pixels compute 0 * sigmoid(0) and are sliced away below.
        # TODO(synk): the pad/slice costs an extra HBM round trip; for
        # bottleneck shapes keep the activation pre-padded (or fused lane-dense)
        # upstream and call sse_forward_flat directly.
        x = jnp.pad(x, ((0, 0), (0, 0), (0, pad)))
    out = sse_forward_flat(x, w)
    if pad:
        out = out[:, :, :HW]
    return out.reshape(N, C, H, W)


def _reference(U, weight):
    C = U.shape[1]
    q = jax.nn.sigmoid(
        jnp.einsum("nchw,c->nhw", U.astype(jnp.float32),
                   weight.reshape(C).astype(jnp.float32)))[:, None, :, :]
    return (U.astype(jnp.float32) * q).astype(U.dtype)


if __name__ == "__main__":
    key = jax.random.PRNGKey(0)

    # 1) Module-default small shape: C=4, HW=256 (multiple of 128), f32.
    k_u, k_w, key = jax.random.split(key, 3)
    N, C, H, W = 2, 4, 16, 16
    U = jax.random.normal(k_u, (N, C, H, W), dtype=jnp.float32)
    weight = jax.random.normal(k_w, (1, C, 1, 1), dtype=jnp.float32) * 0.1
    out = jax.block_until_ready(sse_forward(U, weight))
    ref = _reference(U, weight)
    assert out.shape == (N, C, H, W)
    assert jnp.allclose(out, ref, atol=1e-5, rtol=1e-5)

    # 2) Large-C, single image (exercises the >=2-tile grid for v7x megacore).
    k_u2, k_w2, key = jax.random.split(key, 3)
    N2, C2, H2, W2 = 1, 128, 16, 16
    U2 = jax.random.normal(k_u2, (N2, C2, H2, W2), dtype=jnp.float32)
    weight2 = jax.random.normal(k_w2, (1, C2, 1, 1), dtype=jnp.float32) * 0.05
    out2 = jax.block_until_ready(sse_forward(U2, weight2))
    ref2 = _reference(U2, weight2)
    assert out2.shape == (N2, C2, H2, W2)
    assert jnp.allclose(out2, ref2, atol=1e-4, rtol=1e-4)

    # 3) Bottleneck-style shape: 7x7 (HW=49, padded to 128), bf16 I/O.
    k_u3, k_w3, key = jax.random.split(key, 3)
    N3, C3, H3, W3 = 2, 16, 7, 7
    U3 = jax.random.normal(k_u3, (N3, C3, H3, W3), dtype=jnp.bfloat16)
    weight3 = (jax.random.normal(k_w3, (1, C3, 1, 1), dtype=jnp.float32) * 0.1
               ).astype(jnp.bfloat16)
    out3 = jax.block_until_ready(sse_forward(U3, weight3))
    ref3 = _reference(U3, weight3)
    assert out3.shape == (N3, C3, H3, W3)
    assert out3.dtype == jnp.bfloat16
    assert jnp.allclose(out3.astype(jnp.float32), ref3.astype(jnp.float32),
                        atol=5e-2, rtol=5e-2)

    print("KERNEL_OK")
</pallas_src>

<mosaic_0001>
module attributes {stable_mosaic.version = 11 : i64} {
  func.func @_sse_kernel(%arg0: i32, %arg1: i32, %arg2: memref<1x4x256xf32, #tpu.memory_space<vmem>>, %arg3: memref<1x4xf32, #tpu.memory_space<vmem>>, %arg4: memref<1x4x256xf32, #tpu.memory_space<vmem>>) attributes {dimension_semantics = [#tpu.dimension_semantics<parallel>, #tpu.dimension_semantics<parallel>], iteration_bounds = array<i64: 2, 1>, scalar_prefetch = 0 : i64, scratch_operands = 0 : i64, tpu.core_type = #tpu.core_type<tc>, window_params = [{transform_indices = @transform_0, window_bounds = array<i64: 1, 4, 256>}, {pipeline_mode = #tpu.pipeline_mode<synchronous>, transform_indices = @transform_1, window_bounds = array<i64: 1, 4>}, {transform_indices = @transform_2, window_bounds = array<i64: 1, 4, 256>}]} {
    %c0 = arith.constant 0 : index
    %c0_0 = arith.constant 0 : index
    %c0_1 = arith.constant 0 : index
    %0 = vector.load %arg2[%c0, %c0_0, %c0_1] : memref<1x4x256xf32, #tpu.memory_space<vmem>>, vector<1x4x256xf32>
    %c0_2 = arith.constant 0 : index
    %c0_3 = arith.constant 0 : index
    %1 = vector.load %arg3[%c0_2, %c0_3] : memref<1x4xf32, #tpu.memory_space<vmem>>, vector<1x4xf32>
    %2 = vector.shape_cast %1 : vector<1x4xf32> to vector<1x4x1xf32>
    %3 = vector.broadcast %2 : vector<1x4x1xf32> to vector<1x4x256xf32>
    %4 = arith.mulf %0, %3 : vector<1x4x256xf32>
    %cst = arith.constant dense<0.000000e+00> : vector<1x256xf32>
    %5 = vector.multi_reduction <add>, %4, %cst [1] : vector<1x4x256xf32> to vector<1x256xf32>
    %6 = vector.shape_cast %5 : vector<1x256xf32> to vector<1x1x256xf32>
    %7 = arith.negf %6 : vector<1x1x256xf32>
    %8 = math.exp %7 : vector<1x1x256xf32>
    %cst_4 = arith.constant 1.000000e+00 : f32
    %9 = vector.broadcast %cst_4 : f32 to vector<1x1x256xf32>
    %10 = arith.addf %9, %8 : vector<1x1x256xf32>
    %11 = arith.divf %9, %10 : vector<1x1x256xf32>
    %12 = vector.broadcast %11 : vector<1x1x256xf32> to vector<1x4x256xf32>
    %13 = arith.mulf %0, %12 : vector<1x4x256xf32>
    %c0_5 = arith.constant 0 : index
    %c0_6 = arith.constant 0 : index
    %c0_7 = arith.constant 0 : index
    %14 = vector.load %arg4[%c0_5, %c0_6, %c0_7] : memref<1x4x256xf32, #tpu.memory_space<vmem>>, vector<1x4x256xf32>
    tpu.vector_store %arg4[%c0_5, %c0_6, %c0_7], %13 {strides = array<i32>} : memref<1x4x256xf32, #tpu.memory_space<vmem>>, vector<1x4x256xf32>,
    return
  }
  func.func @transform_0(%arg0: i32, %arg1: i32) -> (i32, i32, i32) {
    %c0_i32 = arith.constant 0 : i32
    %c0_i32_0 = arith.constant 0 : i32
    return %arg0, %c0_i32, %arg1 : i32, i32, i32
  }
  func.func @transform_1(%arg0: i32, %arg1: i32) -> (i32, i32) {
    %c0_i32 = arith.constant 0 : i32
    %c0_i32_0 = arith.constant 0 : i32
    %c0_i32_1 = arith.constant 0 : i32
    return %c0_i32, %c0_i32_0 : i32, i32
  }
  func.func @transform_2(%arg0: i32, %arg1: i32) -> (i32, i32, i32) {
    %c0_i32 = arith.constant 0 : i32
    %c0_i32_0 = arith.constant 0 : i32
    return %arg0, %c0_i32, %arg1 : i32, i32, i32
  }
}

</mosaic_0001>

<bundles_post_ra>
// kernel: tpu_custom_call.1
= control target key start
LH: loop header
LB: loop body
LE: loop exit
PB: predicated region body
PF: predicated region fallthrough
CT: control target
= control target key end

     0   :  { %7 = vsyncpa [#allocation3], 0  ;;  %s828_s0 = inlined_call_operand.hbm [shape: f32[2,4,256], index: 0, kind: input, shape index: {}]   ;;  %s829_s1 = inlined_call_operand.hbm [shape: f32[1,4], index: 1, kind: input, shape index: {}]   ;;  %s830_s2 = inlined_call_operand.hbm [shape: f32[2,4,256], index: 2, kind: output, shape index: {}]  }
   0x1   :  { %9 = vsyncpa [#allocation3 + $0x1], 0 }
   0x2   :  { %10 = vsyncpa [#allocation6], 0 }
   0x3   :  { %11 = vsyncpa [#allocation4], 0 }
   0x4   :  { %13 = vsyncpa [#allocation4 + $0x1], 0  ;;  %s662_s9 = smov 0   ;;  %s664_s10 = smov 0  }
   0x5   :  { %s666_s11 = smov 0   ;;  %s668_s12 = smov 0  }
   0x6   :  { %s670_s13 = smov 0   ;;  %s672_s14 = smov 0  }
   0x7 LB: > { %s392_s15 = sadd.s32 4294967295, %s643_s14   ;;  %s393_s16 = sadd.s32 4294967294, %s643_s14   ;;  %s643_s14 = sphi %s672_s14, %s19_s14   ;;  %s639_s13 = sphi %s670_s13, %s844_s13   ;;  %s635_s12 = sphi %s668_s12, %s843_s12   ;;  %s631_s11 = sphi %s666_s11, %s842_s11   ;;  %s627_s10 = sphi %s664_s10, %s841_s10   ;;  %s623_s9 = sphi %s662_s9, %s840_s9  }
   0x8   : > { %p53_p0 = scmp.ne.s32.totalorder %s627_s10, %s623_s9  ;;  %p696_p1 = scmp.eq.s32.totalorder %s392_s15, 0 }
   0x9   : > { %p700_p2 = scmp.eq.s32.totalorder %s392_s15, 1  ;;  %p106_p3 = scmp.eq.s32.totalorder %s393_s16, 1 }
   0xa   : > { %p706_p4 = por %p696_p1, %p53_p0  ;;  %p394_p5 = scmp.ge.s32.totalorder %s643_s14, 1 }
   0xb   : > { %p711_p6 = por %p106_p3, %p53_p0  ;;  %p113_p7 = scmp.lt.s32.totalorder %s643_s14, 3 }
   0xc   : > { %s125_s23 = sshll.u32 %s829_s1, 4  ;;  %p396_p9 = scmp.ge.s32.totalorder %s643_s14, 2  ;;  %s126_s23 = int_to_ptr.hbm [resolvable:$true] %s125_s23 }
   0xd   : > { %p719_p8 = pnand %p394_p5, %p113_p7  ;;  %s645_s25 = smov [#allocation5]  }
   0xe   : > { %s127_s26 = sshll.u32 %s645_s25, 4  ;;  %s31_s27 = sadd.s32 1, %s639_s13  ;;  %s128_s26 = int_to_ptr.vmem [resolvable:$true] %s127_s26 }
   0xf   : > { %p421_p10 = pneg %p719_p8  ;;  %p33_p12 = scmp.ge.s32.totalorder %s31_s27, 2 }
  0x10   : > { %s40_s28 = sadd.s32 1, %s631_s11  ;;  %p47_p13 = scmp.ne.s32.totalorder %s631_s11, %s627_s10 }
  0x11   : > { %p422_p11 = pnand %p421_p10, %p696_p1  ;;  %p48_p0 = scmp.eq.s32.totalorder %s643_s14, 0 }
  0x12   : > { %s846_s27 = smov (%p33_p12, %s31_s27), 0  ;;  %p741_p5 = por %p700_p2, %p47_p13 }
  0x13   : > { %424 = dma.hbm_to_vmem [thread:$0]  (!%p422_p11), %s126_s23, 16, %s128_s26, [#allocation6]  }
  0x14   : > { %p735_p3 = por %p48_p0, %p47_p13  ;;  %s35_s3 = ssub.s32 %s639_s13, %s846_s27 }
  0x15   : > { %p434_p7 = scmp.lt.s32.totalorder %s643_s14, 2  ;;  %p38_p10 = scmp.eq.s32.totalorder %s35_s3, 0 }
  0x16   : > { %s138_s4 = sand.u32 1, %s631_s11   ;;  %s411_s7 = sshll.u32 %s639_s13, 3 }
  0x17   : > { %s397_s5 = sshll.u32 %s138_s4, 3  ;;  %s149_s16 = scalar_lea.hbm %s828_s0, %s411_s7 }
  0x18   : > { %s750_s6 = scalar_select %p38_p10, %s631_s11, %s40_s28  }
  0x19   : > { %s142_s21 = scalar_lea.vmem [#allocation2], %s397_s5  ;;  %s151_s18 = sshll.u32 %s149_s16, 4  ;;  %s152_s18 = int_to_ptr.hbm [resolvable:$true] %s151_s18 }
  0x1a   : > { %s153_s22 = sshll.u32 %s142_s21, 4  ;;  %p426_p2 = pnand %p434_p7, %p735_p3  ;;  %s154_s22 = int_to_ptr.vmem [resolvable:$true] %s153_s22 }
  0x1b   : > { %s139_s23 = scalar_lea.sflag [#allocation3], %s138_s4  ;;  %162 = sbr.rel (%p719_p8) target bundleno = 224 (0xe0), region = 28 }
  0x1c   : > { %428 = dma.hbm_to_vmem [thread:$0]  (!%p426_p2), %s152_s18, 128, %s154_s22, %s139_s23  }
  0x1d   : > { %s761_s25 = sand.u32 (!%p719_p8), 1, %s627_s10  }
  0x1e   : > { %s401_s26 = sshll.u32 (!%p719_p8), %s761_s25, 3  ;;  %s165_s28 = scalar_lea.sflag (!%p719_p8), [#allocation3], %s761_s25 }
  0x1f   : > { %s168_s3 = scalar_lea.vmem (!%p719_p8), [#allocation2], %s401_s26 }
  0x20   : > { %610 = dma.done.wait (%p706_p4), %s165_s28, 128  }
  0x21   : > { %612 = vsyncadd (%p706_p4), %s165_s28, 4294967168 }
  0x22   : > { %614 = dma.done.wait (%p696_p1), [#allocation6], 16  }
  0x23   : > { %616 = vsyncadd (%p696_p1), [#allocation6], 4294967280  ;;  %v200_v0 = vlaneseq  ;;  %v488_v2 = vld [vmem:[#allocation5] ss:$0 sm:$0xff]  ;;  %v646_v3 = vmov 839922192  }
  0x24   : > { %v208_v4 = vunpack.c.l.s4 %v646_v3  ;;  %v775_v7 = vld [vmem:[%s168_s3] sm:$0xff]  ;;  %vm219_vm0 = vcmask 1043456   ;;  %s412_s17 = sshll.u32 %s635_s12, 3  ;;  %s194_s12 = scalar_lea.vmem [#allocation7], %s401_s26 }
  0x25   : > { %v201_v1 = vshrl.u32 %v200_v0, 7  ;;  %s293_s29 = scalar_lea.hbm %s830_s2, %s412_s17  ;;  %s295_s4 = sshll.u32 %s194_s12, 4  ;;  %s296_s4 = int_to_ptr.vmem [resolvable:$true] %s295_s4 }
  0x26   : > { %v209_v5 = vunpack.c.0.s8 %v208_v4  ;;  %s297_s5 = sshll.u32 %s293_s29, 4  ;;  %s280_s7 = scalar_lea.sflag [#allocation4], %s761_s25  ;;  %s298_s5 = int_to_ptr.hbm [resolvable:$true] %s297_s5 }
  0x27   : > { %487 = vset.pattern.permute.xlu0 %v201_v1  ;;  %s571_s8 = sshra.s32 %s298_s5, 4  ;;  %s577_s22 = scalar_lea.hbm %s830_s2, 16  ;;  %s572_s8 = int_to_ptr.hbm [resolvable:$true] %s571_s8 }
  0x28   : > { %s573_s15 = scalar_lea.hbm %s572_s8, 8  ;;  %p578_p11 = scmp.lt.s32.totalorder %s572_s8, %s830_s2 }
  0x29   : > { %p574_p1 = scmp.ne.s32.totalorder %s572_s8, %s573_s15  ;;  %p579_p12 = scmp.lt.s32.totalorder %s577_s22, %s573_s15 }
  0x2b   : > { %p575_p4 = pnand %p574_p1, %p741_p5  ;;  %p580_p13 = por %p579_p12, %p578_p11 }
  0x2d   : > { %p576_p8 = pneg %p575_p4 }
  0x2f   : > { %204 = vperm.xlu0 %487, %v488_v2   ;;  %p581_p0 = pnand %p580_p13, %p576_p8 }
  0xa1   : > { %v205_v6 = vpop.permute.xlu0 %204 }
  0xa2   : > { %v210_v8 = vperm.slane %v205_v6, %v209_v5 }
  0xa4   : > { %v212_v9 = vmul.f32 %v210_v8, %v775_v7 }
  0xa6   : > { %214 = vst [vmem:[#allocation1] ss:$2 sm:$0xff] %v212_v9 }
  0xad   : > { %v215_v10 = vld.sshfl [vmem:[#allocation1] sm:$0xff pattern:$0x75316420]  ;;  %v216_v11 = vld.sshfl [vmem:[#allocation1 + $0x8] sm:$0xff pattern:$0x75316420] }
  0xae   : > { %v220_v12 = vsel %vm219_vm0, %v215_v10, 0.0  ;;  %v227_v13 = vsel %vm219_vm0, %v216_v11, 0.0 }
  0xaf   : > { %v221_v14 = vrot.slane %v220_v12, 4  ;;  %v228_v15 = vrot.slane %v227_v13, 4 }
  0xb1   : > { %v222_v16 = vadd.f32 %v221_v14, %v220_v12  ;;  %v229_v17 = vadd.f32 %v228_v15, %v227_v13 }
  0xb3   : > { %v223_v18 = vrot.slane %v222_v16, 2  ;;  %v230_v19 = vrot.slane %v229_v17, 2 }
  0xb5   : > { %v224_v20 = vadd.f32 %v223_v18, %v222_v16  ;;  %v231_v21 = vadd.f32 %v230_v19, %v229_v17 }
  0xb7   : > { %v225_v22 = vrot.slane %v224_v20, 1  ;;  %v232_v23 = vrot.slane %v231_v21, 1 }
  0xb9   : > { %v226_v24 = vadd.f32 %v225_v22, %v224_v20  ;;  %v233_v25 = vadd.f32 %v232_v23, %v231_v21 }
  0xbb   : > { %v404_v26 = vmul.f32 -1.442695, %v226_v24  ;;  %v405_v27 = vmul.f32 -1.442695, %v233_v25 }
  0xbd   : > { %489 = vpow2.f32 %v404_v26 }
  0xbe   : > { %491 = vpow2.f32 %v405_v27 }
  0xc3   : > { %v490_v28 = vpop.eup %489 }
  0xc4   : > { %v492_v29 = vpop.eup %491  ;;  %v240_v30 = vadd.f32 1.0, %v490_v28 }
  0xc5   : > { %v241_v31 = vadd.f32 1.0, %v492_v29 }
  0xc6   : > { %493 = vrcp.f32 %v240_v30  ;;  %vm247_vm3 = vweird.f32 %v240_v30  ;;  %v253_v43 = vand.u32 2147483648, %v240_v30  ;;  %v251_v45 = vand.u32 2147483647, %v240_v30 }
  0xc7   : > { %495 = vrcp.f32 %v241_v31  ;;  %v268_v39 = vand.u32 2147483648, %v241_v31  ;;  %v266_v41 = vand.u32 2147483647, %v241_v31  ;;  %vm262_vm5 = vweird.f32 %v241_v31 }
  0xc8   : > { %v254_v50 = vor.u32 1.1754944e-38, %v253_v43  ;;  %vm252_vm8 = vcmp.eq.f32.partialorder %v251_v45, 8.507059e+37 }
  0xc9   : > { %v269_v47 = vor.u32 1.1754944e-38, %v268_v39  ;;  %vm267_vm7 = vcmp.eq.f32.partialorder %v266_v41, 8.507059e+37 }
  0xcc   : > { %v494_v32 = vpop.eup %493 }
  0xcd   : > { %v496_v33 = vpop.eup %495  ;;  %v243_v34 = vmul.f32 %v494_v32, %v240_v30  ;;  %vm248_vm1 = vweird.f32 %v494_v32 }
  0xce   : > { %v258_v35 = vmul.f32 %v496_v33, %v241_v31  ;;  %vm263_vm2 = vweird.f32 %v496_v33  ;;  %vm781_vm4 = vmor %vm247_vm3, %vm248_vm1 }
  0xcf   : > { %v244_v36 = vsub.f32 1.0, %v243_v34  ;;  %vm264_vm6 = vmor %vm262_vm5, %vm263_vm2 }
  0xd0   : > { %v259_v37 = vsub.f32 1.0, %v258_v35 }
  0xd1   : > { %v245_v38 = vmul.f32 %v494_v32, %v244_v36 }
  0xd2   : > { %v260_v40 = vmul.f32 %v496_v33, %v259_v37 }
  0xd3   : > { %v246_v42 = vadd.f32 %v494_v32, %v245_v38 }
  0xd4   : > { %v261_v46 = vadd.f32 %v496_v33, %v260_v40 }
  0xd5   : > { %v250_v48 = vsel %vm781_vm4, %v494_v32, %v246_v42 }
  0xd6   : > { %v265_v49 = vsel %vm264_vm6, %v496_v33, %v261_v46  ;;  %v255_v53 = vsel %vm252_vm8, %v254_v50, %v250_v48 }
  0xd7   : > { %v270_v51 = vsel %vm267_vm7, %v269_v47, %v265_v49 }
  0xd8   : > { %v274_v52 = vrot.slane %v270_v51, 4 }
  0xda   : > { %v275_v54 = vsel %vm219_vm0, %v255_v53, %v274_v52 }
  0xdb   : > { %v277_v55 = vmul.f32 %v275_v54, %v775_v7 }
  0xdd   : > { %278 = vst [vmem:[%s194_s12] sm:$0xff] %v277_v55 }
  0xde   : > { %584 = shalt.err (!%p581_p0)
}
  0xdf   : > { %419 = dma.vmem_to_hbm [thread:$0]  (%p741_p5), %s296_s4, 128, %s298_s5, %s280_s7  }
  0xe0 PF: > { %s309_s25 = sand.u32 1, %s623_s9   ;;  %p430_p3 = pnand %p396_p9, %p711_p6 }
  0xe1   : > { %s310_s26 = scalar_lea.sflag [#allocation4], %s309_s25 }
  0xe2   : > { %p431_p7 = pneg %p430_p3 }
  0xe4   : > { %618 = dma.done.wait (%p431_p7), %s310_s26, 128  }
  0xe5   : > { %620 = vsyncadd (%p431_p7), %s310_s26, 4294967168  ;;  %s19_s14 = sadd.s32 1, %s643_s14   ;;  %s840_s9 = smov %s627_s10 }
  0xe6   : > { %p16_p10 = scmp.ge.s32.totalorder %s19_s14, 4   ;;  %s841_s10 = smov %s631_s11 }
  0xe7   : > { %s842_s11 = smov %s750_s6  ;;  %s843_s12 = smov %s639_s13 }
  0xe8   : > { %s844_s13 = smov %s846_s27  ;;  %18 = sbr.rel (!%p16_p10) target bundleno = 7 (0x7), region = 77 }
  0xed   :  { %316 = vsyncpa [#allocation3], 1 }
  0xee   :  { %318 = vsyncpa [#allocation3 + $0x1], 1 }
  0xef   :  { %319 = vsyncpa [#allocation6], 1 }
  0xf0   :  { %320 = vsyncpa [#allocation4], 1 }
  0xf1   :  { %322 = vsyncpa [#allocation4 + $0x1], 1 }

</bundles_post_ra>
